<compile_context>
chip_gen: v5e
topology: v5e:2x2
jax: 0.10.0
libtpu: 0.0.40
codegen_flags: <defaults>
</compile_context>

<pallas_src>
import functools

import jax
import jax.numpy as jnp
from jax.experimental import pallas as pl
from jax.experimental.pallas import tpu as pltpu


def _round_up(n, m):
    return (n + m - 1) // m * m


def _cdiv(n, m):
    return (n + m - 1) // m


def _power_pool_kernel(x_ref, o_ref, acc_ref, *, power, inv_power,
                       block_cols, last_cols, num_k):
    """Grid = (row_tiles, hw_tiles); the hw axis (last) is the reduction axis.

    x_ref   : (tr, thw) input tile (may be a partial edge block).
    o_ref   : (1, tr)   lane-dense output tile (row index on the lane axis).
    acc_ref : (tr, 128) f32 lane-dense running accumulator (unused if num_k==1).
    """
    k = pl.program_id(1)

    def block_sum(n_valid):
        # f32 per-row partial sums of x**power over the first `n_valid` columns
        # of this block, folded into a lane-dense (tr, 128) value with pure VPU
        # adds (static 128-aligned slices -> no relayout, no per-step XLU).
        full, rem = divmod(n_valid, 128)
        s = None
        for g in range(full):
            xp = x_ref[:, g * 128:(g + 1) * 128].astype(jnp.float32) ** power
            s = xp if s is None else s + xp
        if rem:
            # Boundary lane group only: mask off the unspecified out-of-bounds
            # tail (where-select discards it even if it is inf/NaN garbage).
            xp = x_ref[:, full * 128:(full + 1) * 128].astype(jnp.float32) ** power
            lane = jax.lax.broadcasted_iota(jnp.int32, xp.shape, 1)
            xp = jnp.where(lane < rem, xp, 0.0)
            s = xp if s is None else s + xp
        return s

    def finalize(s):
        # Single cross-lane reduction per row tile, done on the otherwise-idle
        # MXU: ones(1,128) contracted against the 128 partial lanes of every
        # row lands the result directly lane-dense as (1, tr).
        total = jax.lax.dot_general(
            jnp.ones((1, s.shape[1]), jnp.float32), s,
            dimension_numbers=(((1,), (1,)), ((), ())),
            preferred_element_type=jnp.float32)
        # NOTE: odd `power` with negative inputs can give a negative sum; the
        # float-exponent root then yields NaN, matching the reference.
        o_ref[...] = (total ** inv_power).astype(o_ref.dtype)

    if num_k == 1:
        # Single reduction step per row tile: no scratch-accumulator traffic.
        finalize(block_sum(last_cols))
        return

    @pl.when(k == 0)
    def _init():
        acc_ref[...] = jnp.zeros_like(acc_ref)

    if last_cols == block_cols:
        # Spatial axis divides the lane tile evenly: no tail mask anywhere, so
        # a single block_sum body is shared by both branches.
        s = block_sum(block_cols)

        @pl.when(k < num_k - 1)
        def _accum():
            acc_ref[...] += s

        @pl.when(k == num_k - 1)
        def _done():
            finalize(acc_ref[...] + s)
    else:
        @pl.when(k < num_k - 1)
        def _accum():
            acc_ref[...] += block_sum(block_cols)

        @pl.when(k == num_k - 1)
        def _done():
            finalize(acc_ref[...] + block_sum(last_cols))


@functools.partial(jax.jit,
                   static_argnames=("power", "max_row_tile", "max_lane_tile"))
def power_pool2d(x, power=3, max_row_tile=None, max_lane_tile=None):
    if x.ndim != 4:
        raise ValueError("Expected tensor with shape (b, c, h, w).")

    B, C, H, W = x.shape
    rows, hw = B * C, H * W
    x_flat = x.reshape(rows, hw)           # contiguous reshape: no HBM traffic
    itemsize = jnp.dtype(x.dtype).itemsize

    # Generation-aware sizing: this op is pure HBM streaming, so blocks are
    # sized by bytes (~4-8 MiB) to amortize per-grid-step overhead while the
    # double-buffered window stays inside the scoped VMEM limit.
    try:
        vmem_cap = pltpu.get_tpu_info().vmem_capacity_bytes
    except Exception:  # conservative fallback if the query is unavailable
        vmem_cap = 64 * 1024 * 1024
    if vmem_cap >= 100 * 1024 * 1024:       # v5e / v6e: 128 MiB VMEM
        target_block_bytes = 8 * 1024 * 1024
        vmem_limit = 64 * 1024 * 1024
    else:                                   # v7x: 64 MiB VMEM
        target_block_bytes = 4 * 1024 * 1024
        vmem_limit = 40 * 1024 * 1024

    lane_cap = 8192 if max_lane_tile is None else _round_up(max_lane_tile, 128)
    row_cap = 8192 if max_row_tile is None else _round_up(max_row_tile, 128)

    thw = min(lane_cap, _round_up(hw, 128))
    tr = max(128, target_block_bytes // (thw * itemsize))
    tr = min(tr, row_cap, _round_up(rows, 128))
    # Keep at least two row tiles whenever the row count allows it so the
    # "parallel" axis can be split across v7x's two TensorCores (and so DMA /
    # compute overlap exists even when one block could cover everything).
    tr = min(tr, max(128, _round_up(_cdiv(rows, 2), 128)))
    tr = _round_up(tr, 128)                 # tr is the lane dim of the output

    num_r = _cdiv(rows, tr)
    num_k = _cdiv(hw, thw)
    last_cols = hw - (num_k - 1) * thw
    rows_out = num_r * tr

    acc_rows = tr if num_k > 1 else 8       # scratch unused for single-step case

    kernel = functools.partial(
        _power_pool_kernel, power=power, inv_power=1.0 / power,
        block_cols=thw, last_cols=last_cols, num_k=num_k)

    # Blocks are already ~4-8 MiB, so default double-buffering suffices;
    # pl.Buffered(3) would only matter for sub-MiB blocks (i.e. tiny inputs
    # where the whole op is a few microseconds anyway).
    out = pl.pallas_call(
        kernel,
        out_shape=jax.ShapeDtypeStruct((1, rows_out), x.dtype),
        grid_spec=pltpu.PrefetchScalarGridSpec(
            num_scalar_prefetch=0,
            grid=(num_r, num_k),                       # reduction axis last
            in_specs=[pl.BlockSpec((tr, thw), lambda r, k: (r, k))],
            out_specs=pl.BlockSpec((1, tr), lambda r, k: (0, r)),
            scratch_shapes=[pltpu.VMEM((acc_rows, 128), jnp.float32)],
        ),
        compiler_params=pltpu.CompilerParams(
            dimension_semantics=("parallel", "arbitrary"),
            vmem_limit_bytes=vmem_limit,
        ),
    )(x_flat)

    # Row-tail garbage (out-of-bounds rows of partial blocks) lands only in the
    # output columns dropped by this slice.
    return out[0, :rows].reshape(B, C, 1, 1)


def _reference(x, power):
    """Plain-JAX reference for the intended PowerPooling2d computation."""
    s = jnp.sum(x.astype(jnp.float32) ** power, axis=(2, 3), keepdims=True)
    return (s ** (1.0 / power)).astype(x.dtype)


if __name__ == "__main__":
    key = jax.random.PRNGKey(0)
    k1, k2, k3, k4 = jax.random.split(key, 4)

    # 1) Typical power-pooling input: non-negative activations.
    x = jax.random.uniform(k1, (2, 4, 16, 16), dtype=jnp.float32)
    y = power_pool2d(x, power=3)
    jax.block_until_ready(y)
    assert y.shape == (2, 4, 1, 1)
    assert jnp.allclose(y, _reference(x, 3), atol=1e-5, rtol=1e-5)

    # 2) Non-tile-aligned spatial size: exercises the boundary lane-group mask
    #    and partial (rows, hw) edge blocks without any wrapper-side padding.
    x2 = jax.random.uniform(k2, (3, 5, 13, 11), dtype=jnp.float32)
    y2 = power_pool2d(x2, power=2)
    jax.block_until_ready(y2)
    assert y2.shape == (3, 5, 1, 1)
    assert jnp.allclose(y2, _reference(x2, 2), atol=1e-5, rtol=1e-5)

    # 3) Force a multi-step reduction (num_k > 1, with tail) and multiple row
    #    tiles (num_r > 1, last one partial) at a small shape to check the f32
    #    accumulator init / accumulate / finalize path.
    x3 = jax.random.uniform(k3, (2, 80, 9, 20), dtype=jnp.float32)
    y3 = power_pool2d(x3, power=3, max_row_tile=128, max_lane_tile=128)
    jax.block_until_ready(y3)
    assert y3.shape == (2, 80, 1, 1)
    assert jnp.allclose(y3, _reference(x3, 3), atol=1e-5, rtol=1e-5)

    # 4) bf16 input: upcast-to-f32 accumulation path.
    x4 = jax.random.uniform(k4, (2, 4, 16, 16), dtype=jnp.bfloat16)
    y4 = power_pool2d(x4, power=3)
    jax.block_until_ready(y4)
    assert y4.shape == (2, 4, 1, 1)
    assert jnp.allclose(y4.astype(jnp.float32),
                        _reference(x4, 3).astype(jnp.float32),
                        atol=2e-2, rtol=2e-2)

    print("KERNEL_OK")
</pallas_src>

<mosaic_0001>
module attributes {stable_mosaic.version = 11 : i64} {
  func.func @_power_pool_kernel(%arg0: i32, %arg1: i32, %arg2: memref<128x256xf32, #tpu.memory_space<vmem>>, %arg3: memref<1x128xf32, #tpu.memory_space<vmem>>, %arg4: memref<8x128xf32, #tpu.memory_space<vmem>>) attributes {dimension_semantics = [#tpu.dimension_semantics<parallel>, #tpu.dimension_semantics<arbitrary>], iteration_bounds = array<i64: 1, 1>, scalar_prefetch = 0 : i64, scratch_operands = 1 : i64, tpu.core_type = #tpu.core_type<tc>, window_params = [{transform_indices = @transform_0, window_bounds = array<i64: 128, 256>}, {transform_indices = @transform_1, window_bounds = array<i64: 1, 128>}]} {
    %c0 = arith.constant 0 : index
    %c0_0 = arith.constant 0 : index
    %0 = vector.load %arg2[%c0, %c0_0] : memref<128x256xf32, #tpu.memory_space<vmem>>, vector<128x128xf32>
    %1 = arith.mulf %0, %0 : vector<128x128xf32>
    %2 = arith.mulf %0, %1 : vector<128x128xf32>
    %c0_1 = arith.constant 0 : index
    %c128 = arith.constant 128 : index
    %3 = vector.load %arg2[%c0_1, %c128] : memref<128x256xf32, #tpu.memory_space<vmem>>, vector<128x128xf32>
    %4 = arith.mulf %3, %3 : vector<128x128xf32>
    %5 = arith.mulf %3, %4 : vector<128x128xf32>
    %6 = arith.addf %2, %5 : vector<128x128xf32>
    %cst = arith.constant 1.000000e+00 : f32
    %7 = vector.broadcast %cst : f32 to vector<1x128xf32>
    %cst_2 = arith.constant dense<0.000000e+00> : vector<1x128xf32>
    %8 = tpu.matmul %7, %6, %cst_2 {dimension_numbers = #tpu.dot_dimension_numbers<[1], [1], [0], [0], [0, 0, 1, 0], [], []>} : vector<1x128xf32>, vector<128x128xf32>, vector<1x128xf32> -> vector<1x128xf32>
    %cst_3 = arith.constant 0.333333343 : f32
    %9 = vector.broadcast %cst_3 : f32 to vector<1x128xf32>
    %10 = math.powf %8, %9 : vector<1x128xf32>
    %c0_4 = arith.constant 0 : index
    %c0_5 = arith.constant 0 : index
    %11 = vector.load %arg3[%c0_4, %c0_5] : memref<1x128xf32, #tpu.memory_space<vmem>>, vector<1x128xf32>
    tpu.vector_store %arg3[%c0_4, %c0_5], %10 {strides = array<i32>} : memref<1x128xf32, #tpu.memory_space<vmem>>, vector<1x128xf32>,
    return
  }
  func.func @transform_0(%arg0: i32, %arg1: i32) -> (i32, i32) {
    %c0_i32 = arith.constant 0 : i32
    return %arg0, %arg1 : i32, i32
  }
  func.func @transform_1(%arg0: i32, %arg1: i32) -> (i32, i32) {
    %c0_i32 = arith.constant 0 : i32
    %c0_i32_0 = arith.constant 0 : i32
    return %c0_i32, %arg0 : i32, i32
  }
}

</mosaic_0001>

<bundles_post_ra>
// kernel: squeeze.1
= control target key start
LH: loop header
LB: loop body
LE: loop exit
PB: predicated region body
PF: predicated region fallthrough
CT: control target
= control target key end

     0   :  { %s80_s0 = inlined_call_operand.vmem [shape: f32[8], index: 0, kind: input, shape index: {}]   ;;  %s81_s1 = inlined_call_operand.hbm [shape: f32[2,4,1,1], index: 1, kind: output, shape index: {}]  }
   0x1   :  { %v5_v0 = vld [vmem:[%s80_s0] sm:$0x1] }
   0x2   :  { %2 = vsyncpa [#allocation1], 0  ;;  %6 = vst [vmem:[#allocation3] sm:$0x1] %v5_v0  ;;  %vm8_vm0 = vcmask 31744   ;;  %s62_s0 = smov 124  }
   0x3   :  { %s63_s8 = smov [#allocation0]   ;;  %s27_s1 = sshll.u32 %s81_s1, 4  ;;  %s28_s1 = int_to_ptr.hbm [resolvable:$true] %s27_s1 }
   0x4   :  { %s25_s9 = sshll.u32 %s63_s8, 4  ;;  %s26_s9 = int_to_ptr.vmem [resolvable:$true] %s25_s9 }
   0x9   :  { %v10_v1 = vld [vmem:[#allocation3] sm:$0x1]  }
   0xa   :  { %v7_v2 = vld [vmem:[#allocation3] sm:$0x1]   ;;  %11 = vrot.lane.b32.xlu0 %v10_v1, %s62_s0 }
   0xb   :  { %9 = vst.msk [vmem:[#allocation2] sm:$0x1] %vm8_vm0, %v7_v2  }
  0x7c   :  { %v12_v3 = vpop.permute.xlu0 %11  }
  0x7d   :  { %15 = vst.msk [vmem:[#allocation2 + $0x1] sm:$0x1] %vm8_vm0, %v12_v3  }
  0x84   :  { %v18_v4 = vld [vmem:[#allocation2] sm:$0x3] }
  0x85   :  { %21 = vst [vmem:[#allocation0] sm:$0x3] %v18_v4 }
  0x86   :  { %30 = dma.vmem_to_hbm [thread:$0]  %s26_s9, 32, %s28_s1, [#allocation1]  }
  0x87   :  { %60 = dma.done.wait [#allocation1], 32  }
  0x88   :  { %61 = vsyncadd [#allocation1], 4294967264 }
  0x89   :  { %33 = vsyncpa [#allocation1], 1 }

</bundles_post_ra>
